<compile_context>
chip_gen: v7x
topology: tpu7x:2x2x1
jax: 0.10.0
libtpu: 0.0.40
codegen_flags: <defaults>
</compile_context>

<pallas_src>
import jax
import jax.numpy as jnp
from jax.experimental import pallas as pl
from jax.experimental.pallas import tpu as pltpu


def _temp_scale_kernel(temp_ref, x_ref, o_ref):
    # temp_ref: SMEM scalar-prefetch ref, shape (1,), float32.
    inv_t = 1.0 / temp_ref[0]                     # scalar, once per grid step
    x = x_ref[...]
    # Multiply in the native dtype (bf16 stays packed on v6e/v7x); f32 is a no-op cast.
    o_ref[...] = (x * inv_t.astype(x.dtype)).astype(o_ref.dtype)


def _as_lane_dense(x: jax.Array):
    """Reshape/pad x into a (rows, cols) slab with cols a multiple of 128.

    Returns (x2d, orig_shape, orig_size).  Padding (ragged totals only) is
    sliced off after the kernel, so every kernel store is an unmasked,
    lane-dense vst except possibly the final vreg of the padded tail.
    """
    orig_shape = x.shape
    total = int(x.size)
    last = orig_shape[-1] if x.ndim >= 1 else 1

    if x.ndim >= 2 and last % 128 == 0:
        return x.reshape(-1, last), orig_shape, total
    if total % 128 == 0:
        width = 128
        for cand in (4096, 2048, 1024, 512, 256):
            if total % cand == 0:
                width = cand
                break
        return x.reshape(-1, width), orig_shape, total

    # Ragged total: flatten + pad to a multiple of one (8,128) f32 tile.
    width = 1024
    pad = (-total) % width
    flat = jnp.pad(x.reshape(-1), (0, pad))
    return flat.reshape(-1, width), orig_shape, total


def _choose_tiling(M: int, N: int, dtype):
    """Pick (block_rows, block_cols, vmem_limit) for an (M, N) elementwise pass.

    block_cols == 0 means "no lane tiling" (full-width row blocks, 1D grid).
    """
    itemsize = jnp.dtype(dtype).itemsize
    # Native sublane packing: (8,128) f32, (16,128) bf16, (32,128) int8/fp8.
    sub = {4: 8, 2: 16, 1: 32}.get(itemsize, 8)

    try:
        vmem_cap = int(pltpu.get_tpu_info().vmem_capacity_bytes)
    except Exception:
        vmem_cap = 64 * 1024 * 1024
    # Clamp to 64 MiB: v7x has 64 MiB per TC and introspection may report per-chip.
    vmem_cap = min(vmem_cap, 64 * 1024 * 1024)

    # in + out, each double-buffered -> 4 tile-sized live buffers.
    max_tile_bytes = min((vmem_cap * 3) // 5 // 4, 8 * 1024 * 1024)
    min_tile_bytes = 1 * 1024 * 1024  # keep tiles >= ~1 MiB when splitting for steps

    row_bytes = N * itemsize

    # ---- 2D fallback: even `sub` rows would blow the budget -> tile over lanes too.
    if sub * row_bytes > max_tile_bytes:
        block_rows = min(sub, M)
        block_cols = max(128, (max_tile_bytes // (block_rows * itemsize)) // 128 * 128)
        block_cols = min(block_cols, N)
        tile_bytes = block_rows * block_cols * itemsize
        vmem_limit = max(32 << 20, min(4 * tile_bytes + (4 << 20), vmem_cap))
        return int(block_rows), int(block_cols), int(vmem_limit)

    # ---- 1D path: full-width row blocks.
    block_rows = max(sub, (max_tile_bytes // row_bytes) // sub * sub)
    block_rows = min(block_rows, M)
    steps = -(-M // block_rows)

    def _rows_for(nsteps):
        r = -(-M // nsteps)
        r = -(-r // sub) * sub
        return min(max(r, sub), M)

    # Aim for an even step count, >= 4 when tiles can stay >= ~1 MiB, so v7x's
    # two TensorCores balance and the pipeline hides first/last DMAs.
    for target in (8, 6, 4, 2):
        if steps >= target:
            break
        r = _rows_for(target)
        if -(-M // r) == target and r * row_bytes >= min_tile_bytes:
            block_rows, steps = r, target
            break

    # If we still ended on an odd multi-step grid, nudge to even for 2-TC balance.
    if steps > 1 and steps % 2 == 1:
        r = _rows_for(steps + 1)
        if -(-M // r) == steps + 1:
            block_rows, steps = r, steps + 1

    tile_bytes = block_rows * row_bytes
    vmem_limit = max(32 << 20, min(4 * tile_bytes + (4 << 20), vmem_cap))
    return int(block_rows), 0, int(vmem_limit)


def temperature_scaling(logits: jax.Array, temperature: jax.Array,
                        *, donate_logits: bool = False) -> jax.Array:
    """Equivalent of TemperatureScaling.forward: logits / temperature.

    NOTE: output dtype follows `logits` (PyTorch would promote bf16/f32 -> f32);
    result uses x * (1/t), within ~1 ulp of true division.
    """
    x2d, orig_shape, orig_size = _as_lane_dense(logits)
    M, N = x2d.shape
    block_rows, block_cols, vmem_limit = _choose_tiling(M, N, x2d.dtype)

    # Temperature must be 32-bit to live in SMEM via scalar prefetch.
    temp = jnp.asarray(temperature, dtype=jnp.float32).reshape((1,))

    if block_cols == 0:
        grid = (pl.cdiv(M, block_rows),)
        in_spec = pl.BlockSpec((block_rows, N), lambda i, temp_ref: (i, 0))
        out_spec = pl.BlockSpec((block_rows, N), lambda i, temp_ref: (i, 0))
        semantics = ("parallel",)
    else:
        grid = (pl.cdiv(M, block_rows), pl.cdiv(N, block_cols))
        in_spec = pl.BlockSpec((block_rows, block_cols), lambda i, j, temp_ref: (i, j))
        out_spec = pl.BlockSpec((block_rows, block_cols), lambda i, j, temp_ref: (i, j))
        semantics = ("parallel", "parallel")

    grid_spec = pltpu.PrefetchScalarGridSpec(
        num_scalar_prefetch=1,
        grid=grid,
        in_specs=[in_spec],
        out_specs=out_spec,
    )

    out2d = pl.pallas_call(
        _temp_scale_kernel,
        out_shape=jax.ShapeDtypeStruct((M, N), x2d.dtype),
        grid_spec=grid_spec,
        compiler_params=pltpu.CompilerParams(
            dimension_semantics=semantics,
            vmem_limit_bytes=vmem_limit,
        ),
        # Optional donation of the (reshaped) logits buffer into the output.
        input_output_aliases=({1: 0} if donate_logits else {}),
    )(temp, x2d)

    if out2d.size != orig_size:  # ragged path: drop the padded tail
        return out2d.reshape(-1)[:orig_size].reshape(orig_shape)
    return out2d.reshape(orig_shape)


if __name__ == "__main__":
    key = jax.random.PRNGKey(0)
    k1, k2, k3, k4 = jax.random.split(key, 4)

    # Parameter init matching nn.Parameter(torch.ones(1) * 1.5).
    temperature = jnp.ones((1,), dtype=jnp.float32) * 1.5

    # (batch, num_classes) logits, 128-aligned, single block.
    logits = jax.random.normal(k1, (8, 128), dtype=jnp.float32)
    out = jax.block_until_ready(temperature_scaling(logits, temperature))
    assert out.shape == logits.shape and out.dtype == logits.dtype
    assert jnp.allclose(out, logits / temperature[0], rtol=1e-6, atol=1e-6)

    # Larger slab exercising the even multi-step grid (4 x 1 MiB tiles).
    logits_big = jax.random.normal(k2, (512, 2048), dtype=jnp.float32)
    out_big = jax.block_until_ready(temperature_scaling(logits_big, temperature))
    assert jnp.allclose(out_big, logits_big / temperature[0], rtol=1e-6, atol=1e-6)

    # Ragged last dim: padded lane-dense slab, tail sliced off afterwards.
    logits_ragged = jax.random.normal(k3, (4, 50), dtype=jnp.float32)
    out_ragged = jax.block_until_ready(temperature_scaling(logits_ragged, temperature))
    assert out_ragged.shape == logits_ragged.shape
    assert jnp.allclose(out_ragged, logits_ragged / temperature[0], rtol=1e-6, atol=1e-6)

    # bf16 logits: multiply stays packed (16,128); output keeps logits dtype.
    logits_bf16 = jax.random.normal(k4, (64, 256), dtype=jnp.float32).astype(jnp.bfloat16)
    out_bf16 = jax.block_until_ready(temperature_scaling(logits_bf16, temperature))
    ref_bf16 = (logits_bf16.astype(jnp.float32) / temperature[0]).astype(jnp.bfloat16)
    assert out_bf16.dtype == jnp.bfloat16
    assert jnp.allclose(out_bf16.astype(jnp.float32), ref_bf16.astype(jnp.float32),
                        rtol=2e-2, atol=2e-2)

    print("KERNEL_OK")
</pallas_src>

<mosaic_0001>
module attributes {stable_mosaic.version = 11 : i64} {
  func.func @_temp_scale_kernel(%arg0: i32, %arg1: memref<1xf32, #tpu.memory_space<smem>>, %arg2: memref<8x128xf32, #tpu.memory_space<vmem>>, %arg3: memref<8x128xf32, #tpu.memory_space<vmem>>) attributes {dimension_semantics = [#tpu.dimension_semantics<parallel>], iteration_bounds = array<i64: 1>, scalar_prefetch = 1 : i64, scratch_operands = 0 : i64, tpu.core_type = #tpu.core_type<tc>, window_params = [{transform_indices = @transform_0, window_bounds = array<i64: 8, 128>}, {transform_indices = @transform_1, window_bounds = array<i64: 8, 128>}]} {
    %c0 = arith.constant 0 : index
    %0 = memref.load %arg1[%c0] : memref<1xf32, #tpu.memory_space<smem>>
    %cst = arith.constant 1.000000e+00 : f32
    %1 = arith.divf %cst, %0 : f32
    %c0_0 = arith.constant 0 : index
    %c0_1 = arith.constant 0 : index
    %2 = vector.load %arg2[%c0_0, %c0_1] : memref<8x128xf32, #tpu.memory_space<vmem>>, vector<8x128xf32>
    %3 = vector.broadcast %1 : f32 to vector<8x128xf32>
    %4 = arith.mulf %2, %3 : vector<8x128xf32>
    %c0_2 = arith.constant 0 : index
    %c0_3 = arith.constant 0 : index
    %5 = vector.load %arg3[%c0_2, %c0_3] : memref<8x128xf32, #tpu.memory_space<vmem>>, vector<8x128xf32>
    tpu.vector_store %arg3[%c0_2, %c0_3], %4 {strides = array<i32>} : memref<8x128xf32, #tpu.memory_space<vmem>>, vector<8x128xf32>,
    return
  }
  func.func @transform_0(%arg0: i32, %arg1: memref<1xf32, #tpu.memory_space<smem>>) -> (i32, i32) {
    %c0_i32 = arith.constant 0 : i32
    %c0_i32_0 = arith.constant 0 : i32
    return %arg0, %c0_i32 : i32, i32
  }
  func.func @transform_1(%arg0: i32, %arg1: memref<1xf32, #tpu.memory_space<smem>>) -> (i32, i32) {
    %c0_i32 = arith.constant 0 : i32
    %c0_i32_0 = arith.constant 0 : i32
    return %arg0, %c0_i32 : i32, i32
  }
}

</mosaic_0001>

<bundles_post_ra>
// kernel: tpu_custom_call.1
= control target key start
LH: loop header
LB: loop body
LE: loop exit
PB: predicated region body
PF: predicated region fallthrough
CT: control target
= control target key end

     0   :  { %8 = vsyncpa [#allocation5], 0  ;;  %s144_s0 = inlined_call_operand.<no memory space> [shape: f32[1], index: 0, kind: input, shape index: {}]   ;;  %s145_s1 = inlined_call_operand.hbm [shape: f32[8,128], index: 1, kind: input, shape index: {}]   ;;  %s146_s2 = inlined_call_operand.hbm [shape: f32[8,128], index: 2, kind: output, shape index: {}]  }
   0x1   :  { %9 = vsyncpa [#allocation6], 0  ;;  %s100_s9 = smov [#allocation4]   ;;  %s52_s13 = scalar_lea.hbm %s145_s1, 128 }
   0x2   :  { %s16_s10 = sshll.u32 %s100_s9, 4  ;;  %p53_p0 = scmp.ne.s32.totalorder %s145_s1, %s52_s13  ;;  %s17_s10 = int_to_ptr.vmem [resolvable:$true] %s16_s10 }
   0x3   :  { %p56_p1 = scmp.lt.u32.totalorder %s52_s13, %s145_s1 }
   0x5   :  { %p58_p2 = pnand %p56_p1, %p53_p0 }
   0x7   :  { %61 = shalt.err (!%p58_p2)
}
   0x8   :  { %s62_s18 = scalar_lea.vmem %s17_s10, 128  ;;  %p67_p4 = scmp.lt.s32.totalorder %s17_s10, %s17_s10 }
   0x9   :  { %p63_p3 = scmp.ne.s32.totalorder %s17_s10, %s62_s18  ;;  %p68_p5 = scmp.lt.s32.totalorder %s62_s18, %s62_s18 }
   0xb   :  { %p69_p6 = por %p68_p5, %p67_p4 }
   0xd   :  { %p70_p7 = pnand %p69_p6, %p63_p3 }
   0xf   :  { %73 = shalt.err (!%p70_p7)
}
  0x10   :  { %19 = dma.hbm_to_vmem [thread:$0]  %s145_s1, 128, %s17_s10, [#allocation5]   ;;  %v24_v0 = vstv %s144_s0 }
  0x11   :  { %96 = dma.done.wait [#allocation5], 128  }
  0x12   :  { %97 = vsyncadd [#allocation5], 4294967168  ;;  %50 = vrcp.f32 %v24_v0  ;;  %v27_v2 = vld [vmem:[#allocation4] sm:$0xff]  ;;  %s101_s23 = smov [#allocation7]  }
  0x13   :  { %s37_s24 = sshll.u32 %s101_s23, 4  ;;  %s38_s24 = int_to_ptr.vmem [resolvable:$true] %s37_s24 }
  0x14   :  { %s74_s26 = scalar_lea.vmem %s38_s24, 128  ;;  %p79_p9 = scmp.lt.s32.totalorder %s38_s24, %s38_s24 }
  0x15   :  { %p75_p8 = scmp.ne.s32.totalorder %s38_s24, %s74_s26  ;;  %p80_p10 = scmp.lt.s32.totalorder %s74_s26, %s74_s26 }
  0x17   :  { %p81_p11 = por %p80_p10, %p79_p9 }
  0x19   :  { %p82_p12 = pnand %p81_p11, %p75_p8 }
  0x1c   :  { %v51_v1 = vpop.eup %50 }
  0x1d   :  { %46 = vpush %v51_v1 }
  0x4e   :  { %s47_s25 = spop %46 }
  0x4f   :  { %v28_v3 = vstv %s47_s25 }
  0x50   :  { %v29_v4 = vmul.f32 %v28_v3, %v27_v2 }
  0x52   :  { %30 = vst [vmem:[#allocation7] sm:$0xff] %v29_v4 }
  0x53   :  { %85 = shalt.err (!%p82_p12)
}
  0x54   :  { %s86_s27 = scalar_lea.hbm %s146_s2, 128 }
  0x55   :  { %p87_p13 = scmp.ne.s32.totalorder %s146_s2, %s86_s27  ;;  %p90_p0 = scmp.lt.u32.totalorder %s86_s27, %s146_s2 }
  0x57   :  { %p92_p1 = pnand %p90_p0, %p87_p13 }
  0x59   :  { %95 = shalt.err (!%p92_p1)
}
  0x5a   :  { %40 = dma.vmem_to_hbm [thread:$0]  %s38_s24, 128, %s146_s2, [#allocation6]  }
  0x5b   :  { %98 = dma.done.wait [#allocation6], 128  }
  0x5c   :  { %99 = vsyncadd [#allocation6], 4294967168 }
  0x5d   :  { %44 = vsyncpa [#allocation5], 1 }
  0x5e   :  { %45 = vsyncpa [#allocation6], 1 }

</bundles_post_ra>
